<compile_context>
chip_gen: v7x
topology: tpu7x:2x2x1
jax: 0.10.0
libtpu: 0.0.40
codegen_flags: <defaults>
</compile_context>

<pallas_src>
from functools import partial

import jax
import jax.numpy as jnp
from jax.experimental import pallas as pl
from jax.experimental.pallas import tpu as pltpu

_EPS = 1e-12  # F.normalize default eps
_SINGLE_BUFFER_WEIGHTS_OK = None  # cache: does this jax/libtpu accept pl.Buffered(1)?


# ----------------------------- small helpers -------------------------------

def _cdiv(a, b):
    return -(-a // b)


def _round_up(a, m):
    return _cdiv(a, m) * m


def _hw_config():
    """(mxu_rows, two_tensorcores, vmem_limit_bytes) -- defensive, never raises."""
    mxu_rows, two_cores, vmem_cap = 256, False, 128 << 20
    try:
        kind = jax.devices()[0].device_kind.lower()
        if ("v5 lite" in kind) or ("v5e" in kind) or ("v5lite" in kind):
            mxu_rows = 128          # v5e: 128-wide MXU row tile
        if ("v7" in kind) or ("7x" in kind):
            two_cores = True        # v7x: 2 TensorCores per chip
            vmem_cap = 64 << 20
    except Exception:
        pass
    try:
        info = pltpu.get_tpu_info()
        vmem_cap = int(getattr(info, "vmem_capacity_bytes", vmem_cap))
    except Exception:
        pass
    # use about half of physical VMEM for this call; plenty of compiler headroom
    return mxu_rows, two_cores, int(min(vmem_cap // 2, 96 << 20))


def _choose_batch_tile(batch, per_row_bytes, fixed_bytes, vmem_limit, mxu_rows,
                       two_cores):
    """Batch-tile size (multiple of 8, MXU-row aligned when the batch is split)."""
    budget = max(vmem_limit // 2 - fixed_bytes, per_row_bytes * mxu_rows)
    tb_max = min(1024, max(mxu_rows, (budget // per_row_bytes) // mxu_rows * mxu_rows))

    g = _cdiv(batch, tb_max)
    if two_cores and batch >= 2 * mxu_rows:
        g = max(g, 2)               # shard the batch axis across both TensorCores
        g += g % 2                  # even step count -> balanced tiles per core
    if g <= 1:
        # single (possibly ragged) tile; no point padding rows past the batch
        return min(tb_max, _round_up(batch, 8))
    return min(tb_max, _round_up(_cdiv(batch, g), mxu_rows))


# ----------------------------- Pallas kernel -------------------------------

def _fused_embed_kernel(*refs, num_inputs, col_offsets):
    """refs = (x_0..x_{n-1}, w_0..w_{n-1}, out[, scratch]).

    Fused projections + concat + row-wise L2 normalize for one batch tile.
    """
    x_refs = refs[:num_inputs]
    w_refs = refs[num_inputs:2 * num_inputs]
    o_ref = refs[2 * num_inputs]

    if num_inputs == 1:
        xb = x_refs[0][...].astype(jnp.bfloat16)     # bf16 MXU operands
        y = jnp.dot(xb, w_refs[0][...], preferred_element_type=jnp.float32)
        sumsq = jnp.sum(y * y, axis=1, keepdims=True)
        inv = jax.lax.rsqrt(jnp.maximum(sumsq, _EPS * _EPS))   # EUP, f32
        o_ref[...] = (y * inv).astype(o_ref.dtype)
        return

    scratch = refs[2 * num_inputs + 1]               # f32 VMEM (tb, dim)
    sumsq = None
    for idx in range(num_inputs):
        xb = x_refs[idx][...].astype(jnp.bfloat16)
        y = jnp.dot(xb, w_refs[idx][...], preferred_element_type=jnp.float32)
        off = col_offsets[idx]
        dk = w_refs[idx].shape[1]
        scratch[:, off:off + dk] = y                 # static, 128-aligned col slice
        s = jnp.sum(y * y, axis=1, keepdims=True)
        sumsq = s if sumsq is None else sumsq + s
    inv = jax.lax.rsqrt(jnp.maximum(sumsq, _EPS * _EPS))
    o_ref[...] = (scratch[...] * inv).astype(o_ref.dtype)


# ----------------------------- pallas_call wrapper --------------------------

def reid_embed_pallas(xs, ws, out_dtype):
    """xs: list of (B, C_k); ws: list of (C_k, D_k) -> (B, sum D_k), L2 normalized."""
    batch = int(xs[0].shape[0])
    dks = [int(w.shape[1]) for w in ws]
    dim = sum(dks)
    n = len(xs)
    col_offsets, off = [], 0
    for d in dks:
        col_offsets.append(off)
        off += d

    out_itemsize = jnp.dtype(out_dtype).itemsize
    mxu_rows, two_cores, vmem_limit = _hw_config()

    per_row = (2 * sum(int(x.shape[1]) * x.dtype.itemsize for x in xs)   # 2x buffered x tiles
               + 2 * dim * out_itemsize                                  # 2x buffered out tile
               + dim * 4)                                                # f32 scratch / temporaries
    fixed = sum(int(w.size) * w.dtype.itemsize for w in ws)              # weights fetched once
    tb = _choose_batch_tile(batch, per_row, fixed, vmem_limit, mxu_rows, two_cores)
    grid = _cdiv(batch, tb)

    flops = 2 * batch * sum(int(x.shape[1]) * d for x, d in zip(xs, dks)) + 4 * batch * dim
    bytes_accessed = (sum(int(x.size) * x.dtype.itemsize for x in xs) + fixed
                      + batch * dim * out_itemsize)
    cost = pl.CostEstimate(flops=int(flops), transcendentals=int(batch),
                           bytes_accessed=int(bytes_accessed))

    scratch_shapes = [pltpu.VMEM((tb, dim), jnp.float32)] if n > 1 else []

    def _call(single_buffer_weights):
        def w_spec(w):
            kw = {"pipeline_mode": pl.Buffered(1)} if single_buffer_weights else {}
            return pl.BlockSpec((int(w.shape[0]), int(w.shape[1])),
                                lambda i: (0, 0), **kw)

        in_specs = ([pl.BlockSpec((tb, int(x.shape[1])), lambda i: (i, 0)) for x in xs]
                    + [w_spec(w) for w in ws])
        return pl.pallas_call(
            partial(_fused_embed_kernel, num_inputs=n, col_offsets=tuple(col_offsets)),
            out_shape=jax.ShapeDtypeStruct((batch, dim), out_dtype),
            grid=(grid,),
            in_specs=in_specs,
            out_specs=pl.BlockSpec((tb, dim), lambda i: (i, 0)),
            scratch_shapes=scratch_shapes,
            compiler_params=pltpu.CompilerParams(
                dimension_semantics=("parallel",),
                vmem_limit_bytes=int(vmem_limit)),
            cost_estimate=cost,
        )(*xs, *ws)

    global _SINGLE_BUFFER_WEIGHTS_OK
    if _SINGLE_BUFFER_WEIGHTS_OK is None:
        try:
            out = jax.block_until_ready(_call(True))
            _SINGLE_BUFFER_WEIGHTS_OK = True
        except Exception:
            _SINGLE_BUFFER_WEIGHTS_OK = False
            out = _call(False)
        return out
    return _call(_SINGLE_BUFFER_WEIGHTS_OK)


# ----------------------------- Module wrapper ------------------------------

class ReIDEmbedding:
    """JAX/Pallas re-implementation of models.base.ReIDEmbedding (forward only)."""

    def __init__(self, featmap_names=('feat_res5',), in_channels=(2048,), dim=256,
                 norm_type='none', key=None, min_pallas_batch=256,
                 param_dtype=jnp.bfloat16, out_dtype=None):
        self.featmap_names = list(featmap_names)
        self.in_channels = [int(c) for c in in_channels]
        self.dim = int(dim)
        self.min_pallas_batch = int(min_pallas_batch)
        self.out_dtype = out_dtype
        if key is None:
            key = jax.random.PRNGKey(0)

        indv_dims = self._split_embedding_dim()
        self.weights = {}  # per-featmap weight stored transposed (C_in, D_indv)
        keys = jax.random.split(key, len(self.featmap_names))
        for k, name, c, d in zip(keys, self.featmap_names, self.in_channels, indv_dims):
            # PyTorch Linear weight is (out, in) with init.normal_(std=0.01); we
            # store its transpose.  param_dtype=bf16 halves weight HBM bytes and
            # feeds the MXU directly (flagged: differs numerically from f32 Linear).
            # norm_type 'none' and 'protonorm' build the identical projector.
            w = 0.01 * jax.random.normal(k, (c, int(d)), dtype=jnp.float32)
            self.weights[name] = w.astype(param_dtype)

    def _split_embedding_dim(self):
        parts = len(self.in_channels)
        tmp = [self.dim // parts] * parts
        res = self.dim - sum(tmp)
        for i in range(1, res + 1):
            tmp[-i] += 1
        assert sum(tmp) == self.dim
        return tmp

    @staticmethod
    def _flatten_fc_input(x):
        if x.ndim == 4:
            assert x.shape[2] == 1 and x.shape[3] == 1
            return x.reshape(x.shape[0], -1)
        return x

    def __call__(self, featmaps):
        xs = [self._flatten_fc_input(featmaps[k]) for k in self.featmap_names]
        ws = [self.weights[k] for k in self.featmap_names]
        out_dtype = self.out_dtype if self.out_dtype is not None else xs[0].dtype
        if int(xs[0].shape[0]) < self.min_pallas_batch:
            # Small batches are launch/DMA-latency bound in a custom call with poor
            # MXU fill; XLA fuses this trivially.
            return self._xla_forward(xs, ws, out_dtype)
        return reid_embed_pallas(xs, ws, out_dtype)

    @staticmethod
    def _xla_forward(xs, ws, out_dtype):
        ys = [jnp.dot(x.astype(jnp.bfloat16), w, preferred_element_type=jnp.float32)
              for x, w in zip(xs, ws)]
        y = ys[0] if len(ys) == 1 else jnp.concatenate(ys, axis=1)
        inv = jax.lax.rsqrt(jnp.maximum(jnp.sum(y * y, axis=1, keepdims=True),
                                        _EPS * _EPS))
        return (y * inv).astype(out_dtype)


# ----------------------------- Demo / self-check ---------------------------

if __name__ == "__main__":
    key = jax.random.PRNGKey(0)
    k_w1, k_w2, k_w3, k_x1, k_x2, k_x3, k_x4 = jax.random.split(key, 7)

    def ref_forward(xs, ws):
        # same bf16 operand rounding / f32 accumulation as the kernel
        ys = [jnp.dot(x.astype(jnp.bfloat16), w, preferred_element_type=jnp.float32)
              for x, w in zip(xs, ws)]
        y = ys[0] if len(ys) == 1 else jnp.concatenate(ys, axis=1)
        return y / jnp.maximum(jnp.linalg.norm(y, axis=1, keepdims=True), _EPS)

    # ---- 1) single-featmap, f32 in / f32 out (fused project + normalize) ----
    B, C, D = 32, 256, 128
    m1 = ReIDEmbedding(featmap_names=['feat_res5'], in_channels=[C], dim=D,
                       norm_type='none', key=k_w1, min_pallas_batch=1)
    x = jax.random.normal(k_x1, (B, C, 1, 1), dtype=jnp.float32)  # NCHW, H=W=1
    out = jax.block_until_ready(m1({'feat_res5': x}))
    assert out.shape == (B, D) and out.dtype == jnp.float32
    ref = ref_forward([x.reshape(B, C)], [m1.weights['feat_res5']])
    assert jnp.allclose(out, ref, atol=2e-4, rtol=2e-4), "single-featmap mismatch"
    assert jnp.allclose(jnp.linalg.norm(out, axis=1), 1.0, atol=1e-5)

    # ---- 2) multi-featmap, ragged batch: ONE fused kernel, NO jnp.pad copy ----
    # B2=27 is not a multiple of 8 -> exercises the ragged last tile (masked store).
    B2, Cs, dim = 27, (256, 192), 256
    names = ['feat_res4', 'feat_res5']
    m2 = ReIDEmbedding(featmap_names=names, in_channels=list(Cs), dim=dim,
                       norm_type='none', key=k_w2, min_pallas_batch=1)
    x4 = jax.random.normal(k_x2, (B2, Cs[0], 1, 1), dtype=jnp.float32)
    x5 = jax.random.normal(k_x3, (B2, Cs[1], 1, 1), dtype=jnp.float32)
    out2 = jax.block_until_ready(m2({'feat_res4': x4, 'feat_res5': x5}))
    assert out2.shape == (B2, dim) and out2.dtype == jnp.float32
    ref2 = ref_forward([x4.reshape(B2, Cs[0]), x5.reshape(B2, Cs[1])],
                       [m2.weights[n] for n in names])
    assert jnp.allclose(out2, ref2, atol=2e-4, rtol=2e-4), "multi-featmap mismatch"
    assert jnp.allclose(jnp.linalg.norm(out2, axis=1), 1.0, atol=1e-5)

    # ---- 3) bf16 activations in, bf16 embeddings out (halved HBM traffic) ----
    m3 = ReIDEmbedding(featmap_names=['feat_res5'], in_channels=[C], dim=D,
                       norm_type='none', key=k_w3, min_pallas_batch=1,
                       out_dtype=jnp.bfloat16)
    xb = jax.random.normal(k_x4, (B, C, 1, 1), dtype=jnp.float32).astype(jnp.bfloat16)
    out3 = jax.block_until_ready(m3({'feat_res5': xb}))
    assert out3.shape == (B, D) and out3.dtype == jnp.bfloat16
    ref3 = ref_forward([xb.reshape(B, C)], [m3.weights['feat_res5']])
    assert jnp.allclose(out3.astype(jnp.float32), ref3, atol=8e-3, rtol=8e-3)

    print("KERNEL_OK")
</pallas_src>

<mosaic_0001>
module attributes {stable_mosaic.version = 11 : i64} {
  func.func @_fused_embed_kernel(%arg0: i32, %arg1: memref<32x256xf32, #tpu.memory_space<vmem>>, %arg2: memref<256x128xbf16, #tpu.memory_space<vmem>>, %arg3: memref<32x128xf32, #tpu.memory_space<vmem>>) attributes {dimension_semantics = [#tpu.dimension_semantics<parallel>], iteration_bounds = array<i64: 1>, scalar_prefetch = 0 : i64, scratch_operands = 0 : i64, tpu.core_type = #tpu.core_type<tc>, window_params = [{transform_indices = @transform_0, window_bounds = array<i64: 32, 256>}, {pipeline_mode = #tpu.pipeline_mode<synchronous>, transform_indices = @transform_1, window_bounds = array<i64: 256, 128>}, {transform_indices = @transform_2, window_bounds = array<i64: 32, 128>}]} {
    %c0 = arith.constant 0 : index
    %c0_0 = arith.constant 0 : index
    %0 = vector.load %arg1[%c0, %c0_0] : memref<32x256xf32, #tpu.memory_space<vmem>>, vector<32x256xf32>
    %1 = arith.truncf %0 : vector<32x256xf32> to vector<32x256xbf16>
    %c0_1 = arith.constant 0 : index
    %c0_2 = arith.constant 0 : index
    %2 = vector.load %arg2[%c0_1, %c0_2] : memref<256x128xbf16, #tpu.memory_space<vmem>>, vector<256x128xbf16>
    %cst = arith.constant dense<0.000000e+00> : vector<32x128xf32>
    %3 = tpu.matmul %1, %2, %cst {dimension_numbers = #tpu.dot_dimension_numbers<[1], [0], [0], [1], [0, 0, 1, 1], [], []>} : vector<32x256xbf16>, vector<256x128xbf16>, vector<32x128xf32> -> vector<32x128xf32>
    %4 = arith.mulf %3, %3 : vector<32x128xf32>
    %cst_3 = arith.constant dense<0.000000e+00> : vector<32xf32>
    %5 = vector.multi_reduction <add>, %4, %cst_3 [1] : vector<32x128xf32> to vector<32xf32>
    %6 = vector.shape_cast %5 : vector<32xf32> to vector<32x1xf32>
    %cst_4 = arith.constant 1.000000e-24 : f32
    %7 = vector.broadcast %cst_4 : f32 to vector<32x1xf32>
    %8 = arith.maximumf %6, %7 : vector<32x1xf32>
    %9 = math.rsqrt %8 : vector<32x1xf32>
    %10 = vector.broadcast %9 : vector<32x1xf32> to vector<32x128xf32>
    %11 = arith.mulf %3, %10 : vector<32x128xf32>
    %c0_5 = arith.constant 0 : index
    %c0_6 = arith.constant 0 : index
    %12 = vector.load %arg3[%c0_5, %c0_6] : memref<32x128xf32, #tpu.memory_space<vmem>>, vector<32x128xf32>
    tpu.vector_store %arg3[%c0_5, %c0_6], %11 {strides = array<i32>} : memref<32x128xf32, #tpu.memory_space<vmem>>, vector<32x128xf32>,
    return
  }
  func.func @transform_0(%arg0: i32) -> (i32, i32) {
    %c0_i32 = arith.constant 0 : i32
    %c0_i32_0 = arith.constant 0 : i32
    return %arg0, %c0_i32 : i32, i32
  }
  func.func @transform_1(%arg0: i32) -> (i32, i32) {
    %c0_i32 = arith.constant 0 : i32
    %c0_i32_0 = arith.constant 0 : i32
    %c0_i32_1 = arith.constant 0 : i32
    return %c0_i32, %c0_i32_0 : i32, i32
  }
  func.func @transform_2(%arg0: i32) -> (i32, i32) {
    %c0_i32 = arith.constant 0 : i32
    %c0_i32_0 = arith.constant 0 : i32
    return %arg0, %c0_i32 : i32, i32
  }
}

module attributes {stable_mosaic.version = 11 : i64} {
  func.func @_fused_embed_kernel(%arg0: i32, %arg1: memref<32x256xf32, #tpu.memory_space<vmem>>, %arg2: memref<256x128xbf16, #tpu.memory_space<vmem>>, %arg3: memref<32x128xf32, #tpu.memory_space<vmem>>) attributes {dimension_semantics = [#tpu.dimension_semantics<parallel>], iteration_bounds = array<i64: 1>, scalar_prefetch = 0 : i64, scratch_operands = 0 : i64, tpu.core_type = #tpu.core_type<tc>, window_params = [{transform_indices = @transform_0, window_bounds = array<i64: 32, 256>}, {pipeline_mode = #tpu.pipeline_mode<synchronous>, transform_indices = @transform_1, window_bounds = array<i64: 256, 128>}, {transform_indices = @transform_2, window_bounds = array<i64: 32, 128>}]} {
    %c0 = arith.constant 0 : index
    %c0_0 = arith.constant 0 : index
    %0 = vector.load %arg1[%c0, %c0_0] : memref<32x256xf32, #tpu.memory_space<vmem>>, vector<32x256xf32>
    %1 = arith.truncf %0 : vector<32x256xf32> to vector<32x256xbf16>
    %c0_1 = arith.constant 0 : index
    %c0_2 = arith.constant 0 : index
    %2 = vector.load %arg2[%c0_1, %c0_2] : memref<256x128xbf16, #tpu.memory_space<vmem>>, vector<256x128xbf16>
    %cst = arith.constant dense<0.000000e+00> : vector<32x128xf32>
    %3 = tpu.matmul %1, %2, %cst {dimension_numbers = #tpu.dot_dimension_numbers<[1], [0], [0], [1], [0, 0, 1, 1], [], []>} : vector<32x256xbf16>, vector<256x128xbf16>, vector<32x128xf32> -> vector<32x128xf32>
    %4 = arith.mulf %3, %3 : vector<32x128xf32>
    %cst_3 = arith.constant dense<0.000000e+00> : vector<32xf32>
    %5 = vector.multi_reduction <add>, %4, %cst_3 [1] : vector<32x128xf32> to vector<32xf32>
    %6 = vector.shape_cast %5 : vector<32xf32> to vector<32x1xf32>
    %cst_4 = arith.constant 1.000000e-24 : f32
    %7 = vector.broadcast %cst_4 : f32 to vector<32x1xf32>
    %8 = arith.maximumf %6, %7 : vector<32x1xf32>
    %9 = math.rsqrt %8 : vector<32x1xf32>
    %10 = vector.broadcast %9 : vector<32x1xf32> to vector<32x128xf32>
    %11 = arith.mulf %3, %10 : vector<32x128xf32>
    %c0_5 = arith.constant 0 : index
    %c0_6 = arith.constant 0 : index
    %12 = vector.load %arg3[%c0_5, %c0_6] : memref<32x128xf32, #tpu.memory_space<vmem>>, vector<32x128xf32>
    tpu.vector_store %arg3[%c0_5, %c0_6], %11 {strides = array<i32>} : memref<32x128xf32, #tpu.memory_space<vmem>>, vector<32x128xf32>,
    return
  }
  func.func @transform_0(%arg0: i32) -> (i32, i32) {
    %c0_i32 = arith.constant 0 : i32
    %c0_i32_0 = arith.constant 0 : i32
    return %arg0, %c0_i32 : i32, i32
  }
  func.func @transform_1(%arg0: i32) -> (i32, i32) {
    %c0_i32 = arith.constant 0 : i32
    %c0_i32_0 = arith.constant 0 : i32
    %c0_i32_1 = arith.constant 0 : i32
    return %c0_i32, %c0_i32_0 : i32, i32
  }
  func.func @transform_2(%arg0: i32) -> (i32, i32) {
    %c0_i32 = arith.constant 0 : i32
    %c0_i32_0 = arith.constant 0 : i32
    return %arg0, %c0_i32 : i32, i32
  }
}

</mosaic_0001>

<bundles_post_ra>
// kernel: tpu_custom_call.1
= control target key start
LH: loop header
LB: loop body
LE: loop exit
PB: predicated region body
PF: predicated region fallthrough
CT: control target
= control target key end

     0   :  { %7 = vsyncpa [#allocation3], 0  ;;  %s501_s0 = inlined_call_operand.hbm [shape: f32[32,256], index: 0, kind: input, shape index: {}]   ;;  %s502_s1 = inlined_call_operand.hbm [shape: bf16[256,128], index: 1, kind: input, shape index: {}]   ;;  %s503_s2 = inlined_call_operand.hbm [shape: f32[32,128], index: 2, kind: output, shape index: {}]  }
   0x1   :  { %8 = vsyncpa [#allocation6], 0 }
   0x2   :  { %9 = vsyncpa [#allocation4], 0  ;;  %s441_s9 = smov [#allocation2]   ;;  %s369_s13 = scalar_lea.hbm %s501_s0, 1024 }
   0x3   :  { %s15_s10 = sshll.u32 %s441_s9, 4  ;;  %p370_p0 = scmp.ne.s32.totalorder %s501_s0, %s369_s13  ;;  %s16_s10 = int_to_ptr.vmem [resolvable:$true] %s15_s10 }
   0x4   :  { %p373_p1 = scmp.lt.u32.totalorder %s369_s13, %s501_s0 }
   0x6   :  { %p375_p2 = pnand %p373_p1, %p370_p0 }
   0x8   :  { %378 = shalt.err (!%p375_p2)
}
   0x9   :  { %s379_s18 = scalar_lea.vmem %s16_s10, 1024  ;;  %p384_p4 = scmp.lt.s32.totalorder %s16_s10, %s16_s10 }
   0xa   :  { %p380_p3 = scmp.ne.s32.totalorder %s16_s10, %s379_s18  ;;  %p385_p5 = scmp.lt.s32.totalorder %s379_s18, %s379_s18 }
   0xc   :  { %p386_p6 = por %p385_p5, %p384_p4 }
   0xe   :  { %p387_p7 = pnand %p386_p6, %p380_p3 }
  0x10   :  { %390 = shalt.err (!%p387_p7)
}
  0x11   :  { %s442_s19 = smov 256   ;;  %s443_s20 = smov 16  }
  0x12   :  { %21 = dma.hbm_to_vmem [thread:$0]  %s501_s0, 1024, %s16_s10, [#allocation3], %s442_s19, %s442_s19, %s443_s20  }
  0x13   :  { %s444_s23 = smov [#allocation5]   ;;  %s391_s27 = scalar_lea.hbm %s502_s1, 2048 }
  0x14   :  { %s27_s24 = sshll.u32 %s444_s23, 4  ;;  %p392_p8 = scmp.ne.s32.totalorder %s502_s1, %s391_s27  ;;  %s28_s24 = int_to_ptr.vmem [resolvable:$true] %s27_s24 }
  0x15   :  { %p395_p9 = scmp.lt.u32.totalorder %s391_s27, %s502_s1 }
  0x17   :  { %p397_p10 = pnand %p395_p9, %p392_p8 }
  0x19   :  { %400 = shalt.err (!%p397_p10)
}
  0x1a   :  { %s401_s4 = scalar_lea.vmem %s28_s24, 2048  ;;  %p406_p12 = scmp.lt.s32.totalorder %s28_s24, %s28_s24 }
  0x1b   :  { %p402_p11 = scmp.ne.s32.totalorder %s28_s24, %s401_s4  ;;  %p407_p13 = scmp.lt.s32.totalorder %s401_s4, %s401_s4 }
  0x1d   :  { %p408_p0 = por %p407_p13, %p406_p12 }
  0x1f   :  { %p409_p1 = pnand %p408_p0, %p402_p11 }
  0x21   :  { %412 = shalt.err (!%p409_p1)
}
  0x22   :  { %s445_s0 = smov 64   ;;  %s446_s5 = smov 4  }
  0x23   :  { %33 = dma.hbm_to_vmem [thread:$0]  %s502_s1, 2048, %s28_s24, [#allocation6], %s445_s0, %s445_s0, %s446_s5  }
  0x24   :  { %435 = dma.done.wait [#allocation3], 1024  }
  0x25   :  { %436 = vsyncadd [#allocation3], 4294966272 }
  0x26   :  { %437 = dma.done.wait [#allocation6], 2048  }
  0x27   :  { %438 = vsyncadd [#allocation6], 4294965248  ;;  %v345_v0 = vld [vmem:[#allocation5 + $0x40] sm:$0xff]   ;;  %v347_v2 = vld [vmem:[#allocation5 + $0x48] sm:$0xff]   ;;  %s447_s1 = smov [#allocation7]  }
  0x28   :  { %v346_v1 = vld [vmem:[#allocation5] sm:$0xff]   ;;  %292 = vmatprep.subr.bf16.mxu0 %v345_v0  ;;  %320 = vmatprep.subr.bf16.mxu1 %v345_v0  ;;  %v348_v3 = vld [vmem:[#allocation5 + $0x8] sm:$0xff]   ;;  %v349_v4 = vld [vmem:[#allocation5 + $0x50] sm:$0xff]   ;;  %s263_s8 = sshll.u32 %s447_s1, 4  ;;  %s264_s8 = int_to_ptr.vmem [resolvable:$true] %s263_s8 }
  0x29   :  { %293 = vmatpush3.bf16.msra.mxu0 %v346_v1  ;;  %328 = vmatpush3.bf16.msra.mxu1 %v346_v1  ;;  %v350_v5 = vld [vmem:[#allocation5 + $0x10] sm:$0xff]   ;;  %v351_v6 = vld [vmem:[#allocation5 + $0x58] sm:$0xff]   ;;  %v353_v8 = vld [vmem:[#allocation5 + $0x60] sm:$0xff]   ;;  %s413_s9 = scalar_lea.vmem %s264_s8, 512  ;;  %p418_p3 = scmp.lt.s32.totalorder %s264_s8, %s264_s8 }
  0x2a   :  { %294 = vmatprep.subr.bf16.mxu0 %v347_v2  ;;  %321 = vmatprep.subr.bf16.mxu1 %v347_v2  ;;  %v352_v7 = vld [vmem:[#allocation5 + $0x18] sm:$0xff]   ;;  %v354_v9 = vld [vmem:[#allocation5 + $0x20] sm:$0xff]   ;;  %v355_v10 = vld [vmem:[#allocation5 + $0x68] sm:$0xff]   ;;  %p414_p2 = scmp.ne.s32.totalorder %s264_s8, %s413_s9  ;;  %p419_p4 = scmp.lt.s32.totalorder %s413_s9, %s413_s9 }
  0x2b   :  { %v42_v11 = vld [vmem:[#allocation2 + $0x8] sm:$0xff]  ;;  %v44_v12 = vld [vmem:[#allocation2 + $0x18] sm:$0xff]  ;;  %v357_v18 = vld [vmem:[#allocation5 + $0x70] sm:$0xff]  }
  0x2c   :  { %v46_v13 = vld [vmem:[#allocation2 + $0x28] sm:$0xff]  ;;  %v50_v14 = vpack.c.bf16 %v44_v12, %v42_v11  ;;  %v48_v15 = vld [vmem:[#allocation2 + $0x38] sm:$0xff]  ;;  %v358_v19 = vld [vmem:[#allocation5 + $0x30] sm:$0xff]   ;;  %p420_p5 = por %p419_p4, %p418_p3 }
  0x2d   :  { %295 = vmatpush3.bf16.msra.mxu0 %v348_v3  ;;  %329 = vmatpush3.bf16.msra.mxu1 %v348_v3  ;;  %v52_v16 = vpack.c.bf16 %v48_v15, %v46_v13  ;;  %v356_v17 = vld [vmem:[#allocation5 + $0x28] sm:$0xff]   ;;  %v359_v20 = vld [vmem:[#allocation5 + $0x78] sm:$0xff]   ;;  %v41_v22 = vld [vmem:[#allocation2] sm:$0xff] }
  0x2e   :  { %296 = vmatprep.subr.bf16.mxu0 %v349_v4  ;;  %322 = vmatprep.subr.bf16.mxu1 %v349_v4  ;;  %v360_v21 = vld [vmem:[#allocation5 + $0x38] sm:$0xff]   ;;  %v43_v23 = vld [vmem:[#allocation2 + $0x10] sm:$0xff]  ;;  %v45_v24 = vld [vmem:[#allocation2 + $0x20] sm:$0xff]  ;;  %p421_p6 = pnand %p420_p5, %p414_p2 }
  0x2f   :  { %213 = vmatprep.mubr.bf16.mxu0 %v50_v14  ;;  %221 = vmatprep.mubr.bf16.mxu1 %v52_v16  ;;  %v47_v25 = vld [vmem:[#allocation2 + $0x30] sm:$0xff]  ;;  %v49_v26 = vpack.c.bf16 %v43_v23, %v41_v22 }
  0x30   :  { %v51_v27 = vpack.c.bf16 %v47_v25, %v45_v24 }
  0x31   :  { %297 = vmatpush3.bf16.msra.mxu0 %v350_v5  ;;  %330 = vmatpush3.bf16.msra.mxu1 %v350_v5 }
  0x32   :  { %298 = vmatprep.subr.bf16.mxu0 %v351_v6  ;;  %323 = vmatprep.subr.bf16.mxu1 %v351_v6 }
  0x35   :  { %299 = vmatpush3.bf16.msra.mxu0 %v352_v7  ;;  %331 = vmatpush3.bf16.msra.mxu1 %v352_v7 }
  0x36   :  { %300 = vmatprep.subr.bf16.mxu0 %v353_v8  ;;  %324 = vmatprep.subr.bf16.mxu1 %v353_v8 }
  0x39   :  { %301 = vmatpush3.bf16.msra.mxu0 %v354_v9  ;;  %332 = vmatpush3.bf16.msra.mxu1 %v354_v9 }
  0x3a   :  { %302 = vmatprep.subr.bf16.mxu0 %v355_v10  ;;  %325 = vmatprep.subr.bf16.mxu1 %v355_v10 }
  0x3d   :  { %303 = vmatpush3.bf16.msra.mxu0 %v356_v17  ;;  %333 = vmatpush3.bf16.msra.mxu1 %v356_v17 }
  0x3e   :  { %304 = vmatprep.subr.bf16.mxu0 %v357_v18  ;;  %326 = vmatprep.subr.bf16.mxu1 %v357_v18 }
  0x41   :  { %305 = vmatpush3.bf16.msra.mxu0 %v358_v19  ;;  %334 = vmatpush3.bf16.msra.mxu1 %v358_v19 }
  0x42   :  { %306 = vmatprep.subr.bf16.mxu0 %v359_v20  ;;  %327 = vmatprep.subr.bf16.mxu1 %v359_v20 }
  0x45   :  { %307 = vmatpush3.bf16.msra.mxu0 %v360_v21  ;;  %335 = vmatpush3.bf16.msra.mxu1 %v360_v21 }
  0x48   :  { %214 = vmatmul.mubr.bf16.vlgmr.msra.gmra.mrb[0].mxu0 %v49_v26  ;;  %222 = vmatmul.mubr.bf16.vlgmr.msra.gmra.mrb[0].mxu1 %v51_v27 }
 0x11b   :  { %v308_v28 = vpop.f32.mrb[0].mxu0  ;;  %v314_v29 = vpop.f32.mrb[0].mxu1 }
 0x11c   :  { %v309_v30 = vpop.f32.mrb[1].mxu0  ;;  %v315_v31 = vpop.f32.mrb[1].mxu1 }
 0x11d   :  { %v310_v32 = vadd.f32 %v309_v30, %v308_v28  ;;  %v316_v33 = vadd.f32 %v315_v31, %v314_v29  ;;  %v311_v34 = vpop.f32.mrb[2].mxu0  ;;  %v317_v35 = vpop.f32.mrb[2].mxu1 }
 0x11e   :  { %v312_v36 = vpop.f32.mrb[3].mxu0  ;;  %v318_v37 = vpop.f32.mrb[3].mxu1 }
 0x11f   :  { %v313_v38 = vadd.f32 %v312_v36, %v311_v34  ;;  %v319_v39 = vadd.f32 %v318_v37, %v317_v35  ;;  %v232_v40 = vmul.f32 %v316_v33, %v316_v33  ;;  %v230_v41 = vmul.f32 %v310_v32, %v310_v32 }
 0x121   :  { %238 = vadd.xlane.f32.xlu1 %v232_v40  ;;  %234 = vadd.xlane.f32.xlu0 %v230_v41  ;;  %v233_v42 = vmul.f32 %v319_v39, %v319_v39  ;;  %v231_v43 = vmul.f32 %v313_v38, %v313_v38 }
 0x125   :  { %240 = vadd.xlane.f32.xlu1 %v233_v42  ;;  %236 = vadd.xlane.f32.xlu0 %v231_v43 }
 0x1ae   :  { %v239_v44 = vpop.xlane.xlu1 %238  ;;  %v235_v45 = vpop.xlane.xlu0 %234 }
 0x1af   :  { %v244_v46 = vmax.f32 %v239_v44, 1e-24  ;;  %v242_v47 = vmax.f32 %v235_v45, 1e-24 }
 0x1b1   :  { %361 = vrsqrt.f32 %v244_v46 }
 0x1b2   :  { %363 = vrsqrt.f32 %v242_v47  ;;  %v241_v48 = vpop.xlane.xlu1 %240  ;;  %v237_v49 = vpop.xlane.xlu0 %236 }
 0x1b3   :  { %v245_v50 = vmax.f32 %v241_v48, 1e-24  ;;  %v243_v51 = vmax.f32 %v237_v49, 1e-24 }
 0x1b5   :  { %365 = vrsqrt.f32 %v245_v50 }
 0x1b6   :  { %367 = vrsqrt.f32 %v243_v51 }
 0x1bb   :  { %v362_v52 = vpop.eup %361 }
 0x1bc   :  { %v364_v53 = vpop.eup %363  ;;  %v252_v54 = vmul.f32 %v362_v52, %v316_v33 }
 0x1bd   :  { %v250_v55 = vmul.f32 %v364_v53, %v310_v32 }
 0x1be   :  { %256 = vst [vmem:[#allocation7 + $0x10] sm:$0xff] %v252_v54 }
 0x1bf   :  { %v366_v56 = vpop.eup %365  ;;  %254 = vst [vmem:[#allocation7] sm:$0xff] %v250_v55 }
 0x1c0   :  { %v368_v57 = vpop.eup %367  ;;  %v253_v58 = vmul.f32 %v366_v56, %v319_v39 }
 0x1c1   :  { %v251_v59 = vmul.f32 %v368_v57, %v313_v38 }
 0x1c2   :  { %257 = vst [vmem:[#allocation7 + $0x18] sm:$0xff] %v253_v58 }
 0x1c3   :  { %255 = vst [vmem:[#allocation7 + $0x8] sm:$0xff] %v251_v59 }
 0x1c4   :  { %424 = shalt.err (!%p421_p6)
}
 0x1c5   :  { %s425_s12 = scalar_lea.hbm %s503_s2, 512 }
 0x1c6   :  { %p426_p7 = scmp.ne.s32.totalorder %s503_s2, %s425_s12  ;;  %p429_p8 = scmp.lt.u32.totalorder %s425_s12, %s503_s2 }
 0x1c8   :  { %p431_p9 = pnand %p429_p8, %p426_p7 }
 0x1ca   :  { %434 = shalt.err (!%p431_p9)
}
 0x1cb   :  { %s448_s17 = smov 128   ;;  %s449_s18 = smov 8  }
 0x1cc   :  { %269 = dma.vmem_to_hbm [thread:$0]  %s264_s8, 512, %s503_s2, [#allocation4], %s448_s17, %s448_s17, %s449_s18  }
 0x1cd   :  { %439 = dma.done.wait [#allocation4], 512  }
 0x1ce   :  { %440 = vsyncadd [#allocation4], 4294966784 }
 0x1cf   :  { %273 = vsyncpa [#allocation3], 1 }
 0x1d0   :  { %274 = vsyncpa [#allocation6], 1 }
 0x1d1   :  { %275 = vsyncpa [#allocation4], 1 }

// kernel: tpu_custom_call.1
= control target key start
LH: loop header
LB: loop body
LE: loop exit
PB: predicated region body
PF: predicated region fallthrough
CT: control target
= control target key end

     0   :  { %7 = vsyncpa [#allocation3], 0  ;;  %s501_s0 = inlined_call_operand.hbm [shape: f32[32,256], index: 0, kind: input, shape index: {}]   ;;  %s502_s1 = inlined_call_operand.hbm [shape: bf16[256,128], index: 1, kind: input, shape index: {}]   ;;  %s503_s2 = inlined_call_operand.hbm [shape: f32[32,128], index: 2, kind: output, shape index: {}]  }
   0x1   :  { %8 = vsyncpa [#allocation6], 0 }
   0x2   :  { %9 = vsyncpa [#allocation4], 0  ;;  %s441_s9 = smov [#allocation2]   ;;  %s369_s13 = scalar_lea.hbm %s501_s0, 1024 }
   0x3   :  { %s15_s10 = sshll.u32 %s441_s9, 4  ;;  %p370_p0 = scmp.ne.s32.totalorder %s501_s0, %s369_s13  ;;  %s16_s10 = int_to_ptr.vmem [resolvable:$true] %s15_s10 }
   0x4   :  { %p373_p1 = scmp.lt.u32.totalorder %s369_s13, %s501_s0 }
   0x6   :  { %p375_p2 = pnand %p373_p1, %p370_p0 }
   0x8   :  { %378 = shalt.err (!%p375_p2)
}
   0x9   :  { %s379_s18 = scalar_lea.vmem %s16_s10, 1024  ;;  %p384_p4 = scmp.lt.s32.totalorder %s16_s10, %s16_s10 }
   0xa   :  { %p380_p3 = scmp.ne.s32.totalorder %s16_s10, %s379_s18  ;;  %p385_p5 = scmp.lt.s32.totalorder %s379_s18, %s379_s18 }
   0xc   :  { %p386_p6 = por %p385_p5, %p384_p4 }
   0xe   :  { %p387_p7 = pnand %p386_p6, %p380_p3 }
  0x10   :  { %390 = shalt.err (!%p387_p7)
}
  0x11   :  { %s442_s19 = smov 256   ;;  %s443_s20 = smov 16  }
  0x12   :  { %21 = dma.hbm_to_vmem [thread:$0]  %s501_s0, 1024, %s16_s10, [#allocation3], %s442_s19, %s442_s19, %s443_s20  }
  0x13   :  { %s444_s23 = smov [#allocation5]   ;;  %s391_s27 = scalar_lea.hbm %s502_s1, 2048 }
  0x14   :  { %s27_s24 = sshll.u32 %s444_s23, 4  ;;  %p392_p8 = scmp.ne.s32.totalorder %s502_s1, %s391_s27  ;;  %s28_s24 = int_to_ptr.vmem [resolvable:$true] %s27_s24 }
  0x15   :  { %p395_p9 = scmp.lt.u32.totalorder %s391_s27, %s502_s1 }
  0x17   :  { %p397_p10 = pnand %p395_p9, %p392_p8 }
  0x19   :  { %400 = shalt.err (!%p397_p10)
}
  0x1a   :  { %s401_s4 = scalar_lea.vmem %s28_s24, 2048  ;;  %p406_p12 = scmp.lt.s32.totalorder %s28_s24, %s28_s24 }
  0x1b   :  { %p402_p11 = scmp.ne.s32.totalorder %s28_s24, %s401_s4  ;;  %p407_p13 = scmp.lt.s32.totalorder %s401_s4, %s401_s4 }
  0x1d   :  { %p408_p0 = por %p407_p13, %p406_p12 }
  0x1f   :  { %p409_p1 = pnand %p408_p0, %p402_p11 }
  0x21   :  { %412 = shalt.err (!%p409_p1)
}
  0x22   :  { %s445_s0 = smov 64   ;;  %s446_s5 = smov 4  }
  0x23   :  { %33 = dma.hbm_to_vmem [thread:$0]  %s502_s1, 2048, %s28_s24, [#allocation6], %s445_s0, %s445_s0, %s446_s5  }
  0x24   :  { %435 = dma.done.wait [#allocation3], 1024  }
  0x25   :  { %436 = vsyncadd [#allocation3], 4294966272 }
  0x26   :  { %437 = dma.done.wait [#allocation6], 2048  }
  0x27   :  { %438 = vsyncadd [#allocation6], 4294965248  ;;  %v345_v0 = vld [vmem:[#allocation5 + $0x40] sm:$0xff]   ;;  %v347_v2 = vld [vmem:[#allocation5 + $0x48] sm:$0xff]   ;;  %s447_s1 = smov [#allocation7]  }
  0x28   :  { %v346_v1 = vld [vmem:[#allocation5] sm:$0xff]   ;;  %292 = vmatprep.subr.bf16.mxu0 %v345_v0  ;;  %320 = vmatprep.subr.bf16.mxu1 %v345_v0  ;;  %v348_v3 = vld [vmem:[#allocation5 + $0x8] sm:$0xff]   ;;  %v349_v4 = vld [vmem:[#allocation5 + $0x50] sm:$0xff]   ;;  %s263_s8 = sshll.u32 %s447_s1, 4  ;;  %s264_s8 = int_to_ptr.vmem [resolvable:$true] %s263_s8 }
  0x29   :  { %293 = vmatpush3.bf16.msra.mxu0 %v346_v1  ;;  %328 = vmatpush3.bf16.msra.mxu1 %v346_v1  ;;  %v350_v5 = vld [vmem:[#allocation5 + $0x10] sm:$0xff]   ;;  %v351_v6 = vld [vmem:[#allocation5 + $0x58] sm:$0xff]   ;;  %v353_v8 = vld [vmem:[#allocation5 + $0x60] sm:$0xff]   ;;  %s413_s9 = scalar_lea.vmem %s264_s8, 512  ;;  %p418_p3 = scmp.lt.s32.totalorder %s264_s8, %s264_s8 }
  0x2a   :  { %294 = vmatprep.subr.bf16.mxu0 %v347_v2  ;;  %321 = vmatprep.subr.bf16.mxu1 %v347_v2  ;;  %v352_v7 = vld [vmem:[#allocation5 + $0x18] sm:$0xff]   ;;  %v354_v9 = vld [vmem:[#allocation5 + $0x20] sm:$0xff]   ;;  %v355_v10 = vld [vmem:[#allocation5 + $0x68] sm:$0xff]   ;;  %p414_p2 = scmp.ne.s32.totalorder %s264_s8, %s413_s9  ;;  %p419_p4 = scmp.lt.s32.totalorder %s413_s9, %s413_s9 }
  0x2b   :  { %v42_v11 = vld [vmem:[#allocation2 + $0x8] sm:$0xff]  ;;  %v44_v12 = vld [vmem:[#allocation2 + $0x18] sm:$0xff]  ;;  %v357_v18 = vld [vmem:[#allocation5 + $0x70] sm:$0xff]  }
  0x2c   :  { %v46_v13 = vld [vmem:[#allocation2 + $0x28] sm:$0xff]  ;;  %v50_v14 = vpack.c.bf16 %v44_v12, %v42_v11  ;;  %v48_v15 = vld [vmem:[#allocation2 + $0x38] sm:$0xff]  ;;  %v358_v19 = vld [vmem:[#allocation5 + $0x30] sm:$0xff]   ;;  %p420_p5 = por %p419_p4, %p418_p3 }
  0x2d   :  { %295 = vmatpush3.bf16.msra.mxu0 %v348_v3  ;;  %329 = vmatpush3.bf16.msra.mxu1 %v348_v3  ;;  %v52_v16 = vpack.c.bf16 %v48_v15, %v46_v13  ;;  %v356_v17 = vld [vmem:[#allocation5 + $0x28] sm:$0xff]   ;;  %v359_v20 = vld [vmem:[#allocation5 + $0x78] sm:$0xff]   ;;  %v41_v22 = vld [vmem:[#allocation2] sm:$0xff] }
  0x2e   :  { %296 = vmatprep.subr.bf16.mxu0 %v349_v4  ;;  %322 = vmatprep.subr.bf16.mxu1 %v349_v4  ;;  %v360_v21 = vld [vmem:[#allocation5 + $0x38] sm:$0xff]   ;;  %v43_v23 = vld [vmem:[#allocation2 + $0x10] sm:$0xff]  ;;  %v45_v24 = vld [vmem:[#allocation2 + $0x20] sm:$0xff]  ;;  %p421_p6 = pnand %p420_p5, %p414_p2 }
  0x2f   :  { %213 = vmatprep.mubr.bf16.mxu0 %v50_v14  ;;  %221 = vmatprep.mubr.bf16.mxu1 %v52_v16  ;;  %v47_v25 = vld [vmem:[#allocation2 + $0x30] sm:$0xff]  ;;  %v49_v26 = vpack.c.bf16 %v43_v23, %v41_v22 }
  0x30   :  { %v51_v27 = vpack.c.bf16 %v47_v25, %v45_v24 }
  0x31   :  { %297 = vmatpush3.bf16.msra.mxu0 %v350_v5  ;;  %330 = vmatpush3.bf16.msra.mxu1 %v350_v5 }
  0x32   :  { %298 = vmatprep.subr.bf16.mxu0 %v351_v6  ;;  %323 = vmatprep.subr.bf16.mxu1 %v351_v6 }
  0x35   :  { %299 = vmatpush3.bf16.msra.mxu0 %v352_v7  ;;  %331 = vmatpush3.bf16.msra.mxu1 %v352_v7 }
  0x36   :  { %300 = vmatprep.subr.bf16.mxu0 %v353_v8  ;;  %324 = vmatprep.subr.bf16.mxu1 %v353_v8 }
  0x39   :  { %301 = vmatpush3.bf16.msra.mxu0 %v354_v9  ;;  %332 = vmatpush3.bf16.msra.mxu1 %v354_v9 }
  0x3a   :  { %302 = vmatprep.subr.bf16.mxu0 %v355_v10  ;;  %325 = vmatprep.subr.bf16.mxu1 %v355_v10 }
  0x3d   :  { %303 = vmatpush3.bf16.msra.mxu0 %v356_v17  ;;  %333 = vmatpush3.bf16.msra.mxu1 %v356_v17 }
  0x3e   :  { %304 = vmatprep.subr.bf16.mxu0 %v357_v18  ;;  %326 = vmatprep.subr.bf16.mxu1 %v357_v18 }
  0x41   :  { %305 = vmatpush3.bf16.msra.mxu0 %v358_v19  ;;  %334 = vmatpush3.bf16.msra.mxu1 %v358_v19 }
  0x42   :  { %306 = vmatprep.subr.bf16.mxu0 %v359_v20  ;;  %327 = vmatprep.subr.bf16.mxu1 %v359_v20 }
  0x45   :  { %307 = vmatpush3.bf16.msra.mxu0 %v360_v21  ;;  %335 = vmatpush3.bf16.msra.mxu1 %v360_v21 }
  0x48   :  { %214 = vmatmul.mubr.bf16.vlgmr.msra.gmra.mrb[0].mxu0 %v49_v26  ;;  %222 = vmatmul.mubr.bf16.vlgmr.msra.gmra.mrb[0].mxu1 %v51_v27 }
 0x11b   :  { %v308_v28 = vpop.f32.mrb[0].mxu0  ;;  %v314_v29 = vpop.f32.mrb[0].mxu1 }
 0x11c   :  { %v309_v30 = vpop.f32.mrb[1].mxu0  ;;  %v315_v31 = vpop.f32.mrb[1].mxu1 }
 0x11d   :  { %v310_v32 = vadd.f32 %v309_v30, %v308_v28  ;;  %v316_v33 = vadd.f32 %v315_v31, %v314_v29  ;;  %v311_v34 = vpop.f32.mrb[2].mxu0  ;;  %v317_v35 = vpop.f32.mrb[2].mxu1 }
 0x11e   :  { %v312_v36 = vpop.f32.mrb[3].mxu0  ;;  %v318_v37 = vpop.f32.mrb[3].mxu1 }
 0x11f   :  { %v313_v38 = vadd.f32 %v312_v36, %v311_v34  ;;  %v319_v39 = vadd.f32 %v318_v37, %v317_v35  ;;  %v232_v40 = vmul.f32 %v316_v33, %v316_v33  ;;  %v230_v41 = vmul.f32 %v310_v32, %v310_v32 }
 0x121   :  { %238 = vadd.xlane.f32.xlu1 %v232_v40  ;;  %234 = vadd.xlane.f32.xlu0 %v230_v41  ;;  %v233_v42 = vmul.f32 %v319_v39, %v319_v39  ;;  %v231_v43 = vmul.f32 %v313_v38, %v313_v38 }
 0x125   :  { %240 = vadd.xlane.f32.xlu1 %v233_v42  ;;  %236 = vadd.xlane.f32.xlu0 %v231_v43 }
 0x1ae   :  { %v239_v44 = vpop.xlane.xlu1 %238  ;;  %v235_v45 = vpop.xlane.xlu0 %234 }
 0x1af   :  { %v244_v46 = vmax.f32 %v239_v44, 1e-24  ;;  %v242_v47 = vmax.f32 %v235_v45, 1e-24 }
 0x1b1   :  { %361 = vrsqrt.f32 %v244_v46 }
 0x1b2   :  { %363 = vrsqrt.f32 %v242_v47  ;;  %v241_v48 = vpop.xlane.xlu1 %240  ;;  %v237_v49 = vpop.xlane.xlu0 %236 }
 0x1b3   :  { %v245_v50 = vmax.f32 %v241_v48, 1e-24  ;;  %v243_v51 = vmax.f32 %v237_v49, 1e-24 }
 0x1b5   :  { %365 = vrsqrt.f32 %v245_v50 }
 0x1b6   :  { %367 = vrsqrt.f32 %v243_v51 }
 0x1bb   :  { %v362_v52 = vpop.eup %361 }
 0x1bc   :  { %v364_v53 = vpop.eup %363  ;;  %v252_v54 = vmul.f32 %v362_v52, %v316_v33 }
 0x1bd   :  { %v250_v55 = vmul.f32 %v364_v53, %v310_v32 }
 0x1be   :  { %256 = vst [vmem:[#allocation7 + $0x10] sm:$0xff] %v252_v54 }
 0x1bf   :  { %v366_v56 = vpop.eup %365  ;;  %254 = vst [vmem:[#allocation7] sm:$0xff] %v250_v55 }
 0x1c0   :  { %v368_v57 = vpop.eup %367  ;;  %v253_v58 = vmul.f32 %v366_v56, %v319_v39 }
 0x1c1   :  { %v251_v59 = vmul.f32 %v368_v57, %v313_v38 }
 0x1c2   :  { %257 = vst [vmem:[#allocation7 + $0x18] sm:$0xff] %v253_v58 }
 0x1c3   :  { %255 = vst [vmem:[#allocation7 + $0x8] sm:$0xff] %v251_v59 }
 0x1c4   :  { %424 = shalt.err (!%p421_p6)
}
 0x1c5   :  { %s425_s12 = scalar_lea.hbm %s503_s2, 512 }
 0x1c6   :  { %p426_p7 = scmp.ne.s32.totalorder %s503_s2, %s425_s12  ;;  %p429_p8 = scmp.lt.u32.totalorder %s425_s12, %s503_s2 }
 0x1c8   :  { %p431_p9 = pnand %p429_p8, %p426_p7 }
 0x1ca   :  { %434 = shalt.err (!%p431_p9)
}
 0x1cb   :  { %s448_s17 = smov 128   ;;  %s449_s18 = smov 8  }
 0x1cc   :  { %269 = dma.vmem_to_hbm [thread:$0]  %s264_s8, 512, %s503_s2, [#allocation4], %s448_s17, %s448_s17, %s449_s18  }
 0x1cd   :  { %439 = dma.done.wait [#allocation4], 512  }
 0x1ce   :  { %440 = vsyncadd [#allocation4], 4294966784 }
 0x1cf   :  { %273 = vsyncpa [#allocation3], 1 }
 0x1d0   :  { %274 = vsyncpa [#allocation6], 1 }
 0x1d1   :  { %275 = vsyncpa [#allocation4], 1 }

</bundles_post_ra>
